<compile_context>
chip_gen: v7x
topology: tpu7x:2x2x1
jax: 0.10.0
libtpu: 0.0.40
codegen_flags: <defaults>
</compile_context>

<pallas_src>
import functools

import jax
import jax.numpy as jnp
from jax.experimental import pallas as pl
from jax.experimental.pallas import tpu as pltpu

LANE = 128  # TPU lane width; lane-dense output stores want multiples of this.


def _round_up(n, m):
    return ((n + m - 1) // m) * m


def _fused_mlp_kernel(*refs, num_layers, apply_relu, bf16_epilogue):
    """refs = (x_ref, w0_ref, b0_ref, ..., w{L-1}_ref, b{L-1}_ref, o_ref).

    Chains y = act(y @ W_l + b_l) for all layers inside one kernel body
    (unrolled at trace time, so every weight/bias is loaded exactly once).
    Matmul operands are bf16, accumulation is f32 on the MXU; the bias-add /
    ReLU epilogue runs in f32 (default) or bf16 (bf16_epilogue=True).
    """
    x_ref = refs[0]
    o_ref = refs[-1]
    wb_refs = refs[1:-1]

    y = x_ref[...]                                   # (Bt, F_in) f32
    for l in range(num_layers):
        w = wb_refs[2 * l][...]                      # (F_in_l, F_out_l) bf16
        b = wb_refs[2 * l + 1][...]                  # (1, F_out_l) f32 -> broadcast
        acc = jnp.dot(y.astype(jnp.bfloat16), w,
                      preferred_element_type=jnp.float32)
        if bf16_epilogue:
            # bf16 VALU path (v6e/v7x): halves per-row epilogue VPU work.
            y = acc.astype(jnp.bfloat16) + b.astype(jnp.bfloat16)
        else:
            y = acc + b
        if apply_relu:
            y = jnp.maximum(y, 0.0)
    o_ref[...] = y.astype(o_ref.dtype)


def fused_mlp(x, kernel_params, *, apply_relu=True, out_dtype=jnp.bfloat16,
              bf16_epilogue=False, batch_tile=2048, small_batch_threshold=512):
    """Run the whole fused network in a single pallas_call.

    x: (B, F_in) f32.  kernel_params: list of (w bf16 (F_in_l, F_out_l),
    b f32 (1, F_out_l)) with the last F_out already padded to a multiple of 128.
    Returns (B, F_out_last_padded) in `out_dtype` (bf16 by default to halve
    output HBM traffic; the caller upcasts after slicing).
    """
    B, F_in = x.shape
    F_out = kernel_params[-1][0].shape[1]
    num_layers = len(kernel_params)

    flat = []
    for w, b in kernel_params:
        flat += [w, b]

    kernel = functools.partial(
        _fused_mlp_kernel, num_layers=num_layers, apply_relu=apply_relu,
        bf16_epilogue=bf16_epilogue)

    out_itemsize = jnp.dtype(out_dtype).itemsize
    flops = 2 * B * sum(w.shape[0] * w.shape[1] for w, _ in kernel_params)
    bytes_accessed = (
        x.size * x.dtype.itemsize
        + sum(w.size * w.dtype.itemsize + b.size * b.dtype.itemsize
              for w, b in kernel_params)
        + B * F_out * out_itemsize)
    cost = pl.CostEstimate(flops=flops, transcendentals=0,
                           bytes_accessed=bytes_accessed)
    out_shape = jax.ShapeDtypeStruct((B, F_out), out_dtype)

    if B <= small_batch_threshold:
        # Genuinely tiny batch: whole arrays as single VMEM blocks, no grid axis
        # (a 1-long grid only adds per-step bookkeeping; this is latency-bound).
        vmem = pl.BlockSpec(memory_space=pltpu.MemorySpace.VMEM)
        return pl.pallas_call(
            kernel,
            out_shape=out_shape,
            in_specs=[vmem] * (1 + len(flat)),
            out_specs=vmem,
            cost_estimate=cost,
        )(x, *flat)

    # ---- gridded, pipelined path (mem-bound streaming regime) --------------
    # Tile the batch on a "parallel" grid axis (shards across v7x's 2 TCs).
    # Ensure at least 2 grid steps so both TensorCores get work and the
    # BlockSpec pipeline has something to overlap.
    tile = min(batch_tile, max(16, _round_up(pl.cdiv(B, 2), 16)))

    # VMEM working-set estimate: double-buffered x/out blocks + resident
    # weights/biases + a few live activation tiles.  Shrink the tile if it
    # would not fit comfortably, then set vmem_limit_bytes explicitly
    # (v5e's scoped default is only 16 MiB vs 32 MiB on v6e/v7x).
    weight_bytes = 2 * sum(w.size * w.dtype.itemsize + b.size * b.dtype.itemsize
                           for w, b in kernel_params)
    max_width = max([F_in] + [w.shape[1] for w, _ in kernel_params])

    def working_set(t):
        stream = 2 * (t * F_in * x.dtype.itemsize + t * F_out * out_itemsize)
        act = 3 * t * max_width * 4
        return stream + weight_bytes + act

    while tile > 16 and working_set(tile) > (40 << 20):
        tile = max(16, _round_up(tile // 2, 16))
    vmem_limit = int(min(max(2 * working_set(tile), 32 << 20), 64 << 20))

    grid = (pl.cdiv(B, tile),)
    # NOTE: when B % tile != 0, the partial last block computes on out-of-range
    # rows of the VMEM buffer; those rows are never stored (masked writeback),
    # so this is correct by construction — do not "fix" by reading padded rows.
    wb_specs = []
    for w, b in kernel_params:
        # Constant block index -> weights/biases are DMA'd once and stay resident.
        wb_specs.append(pl.BlockSpec(w.shape, lambda i: (0, 0)))
        wb_specs.append(pl.BlockSpec(b.shape, lambda i: (0, 0)))

    return pl.pallas_call(
        kernel,
        out_shape=out_shape,
        grid_spec=pltpu.PrefetchScalarGridSpec(
            num_scalar_prefetch=0,
            grid=grid,
            in_specs=[pl.BlockSpec((tile, F_in), lambda i: (i, 0))]
                     + wb_specs,
            out_specs=pl.BlockSpec((tile, F_out), lambda i: (i, 0)),
        ),
        compiler_params=pltpu.CompilerParams(
            dimension_semantics=("parallel",),
            vmem_limit_bytes=vmem_limit),
        cost_estimate=cost,
    )(x, *flat)


def init_params(key, layers, n_features, n_classes):
    """Deterministic init mimicking nn.Linear: weight (out, in), bias (out,).

    Stored transposed as (in, out) / (1, out) for the kernel's x @ W layout.
    """
    layers_in = [n_features] + layers
    layers_out = layers + [n_classes]
    params = []
    for f_in, f_out in zip(layers_in, layers_out):
        key, kw, kb = jax.random.split(key, 3)
        bound = 1.0 / jnp.sqrt(f_in)
        w = jax.random.uniform(kw, (f_out, f_in), jnp.float32, -bound, bound)
        b = jax.random.uniform(kb, (f_out,), jnp.float32, -bound, bound)
        params.append((w.T, b.reshape(1, f_out)))
    return params


def prepare_params(params):
    """One-time, outside-the-hot-loop prep of kernel-side parameters:
      * cast weights to bf16 (MXU-native operands, halves weight DMA),
      * zero-pad the LAST layer's output dim up to a multiple of 128 so the
        kernel's only store is lane-dense (relu(0*x + 0) = 0, sliced off later).
    Hidden dims are left as-is (padding them only adds VPU work; MXU has slack).
    Returns (kernel_params, n_classes).
    """
    kparams = []
    n_layers = len(params)
    n_classes = params[-1][0].shape[1]
    for l, (w, b) in enumerate(params):
        if l == n_layers - 1:
            f_out = w.shape[1]
            f_pad = _round_up(f_out, LANE)
            if f_pad != f_out:
                w = jnp.pad(w, ((0, 0), (0, f_pad - f_out)))
                b = jnp.pad(b, ((0, 0), (0, f_pad - f_out)))
        kparams.append((w.astype(jnp.bfloat16), b.astype(jnp.float32)))
    return kparams, n_classes


def my_nnetwork_forward(x, kernel_params, n_classes, *, apply_relu=True,
                        out_dtype=jnp.bfloat16, bf16_epilogue=False):
    """Sequential NonLinearActivation layers (ReLU after EVERY layer, matching
    the PyTorch module), fused into one kernel; slice off the lane padding and
    upcast the (by default bf16) kernel output back to f32."""
    # TODO(synk): the PyTorch module takes an arbitrary `activation` callable;
    # only ReLU (and identity) are supported as a compile-time flag here.
    y = fused_mlp(x, kernel_params, apply_relu=apply_relu,
                  out_dtype=out_dtype, bf16_epilogue=bf16_epilogue)
    return y[:, :n_classes].astype(jnp.float32)


if __name__ == "__main__":
    # Small shapes consistent with the module: MLP over flat feature vectors.
    n_features = 32
    layers = [64, 64]
    n_classes = 16

    key = jax.random.PRNGKey(0)
    key, kx_small, kx_big = jax.random.split(key, 3)

    params = init_params(key, layers, n_features, n_classes)        # f32, (in,out)
    kernel_params, n_out = prepare_params(params)                   # bf16 + padded

    def ref_forward(x):   # pure-f32 PyTorch-equivalent math
        r = x
        for w, b in params:
            r = jnp.maximum(r @ w + b, 0.0)
        return r

    # ---- tiny batch: grid-free single-block path ---------------------------
    x_small = jax.random.normal(kx_small, (8, n_features), dtype=jnp.float32)
    y_small = jax.block_until_ready(
        my_nnetwork_forward(x_small, kernel_params, n_out))
    assert y_small.shape == (8, n_classes), y_small.shape
    assert y_small.dtype == jnp.float32
    r_small = ref_forward(x_small)
    assert jnp.allclose(y_small, r_small, atol=5e-2, rtol=5e-2), \
        float(jnp.max(jnp.abs(y_small - r_small)))

    # ---- mid-size batch: gridded, pipelined path (>=2 steps, partial last
    # block exercises the masked writeback) ---------------------------------
    x_big = jax.random.normal(kx_big, (1000, n_features), dtype=jnp.float32)
    y_big = jax.block_until_ready(
        my_nnetwork_forward(x_big, kernel_params, n_out))
    assert y_big.shape == (1000, n_classes), y_big.shape
    assert y_big.dtype == jnp.float32
    r_big = ref_forward(x_big)
    assert jnp.allclose(y_big, r_big, atol=5e-2, rtol=5e-2), \
        float(jnp.max(jnp.abs(y_big - r_big)))

    print("KERNEL_OK")
</pallas_src>

<mosaic_0001>
module attributes {stable_mosaic.version = 11 : i64} {
  func.func @_fused_mlp_kernel(%arg0: memref<8x32xf32, #tpu.memory_space<vmem>>, %arg1: memref<32x64xbf16, #tpu.memory_space<vmem>>, %arg2: memref<1x64xf32, #tpu.memory_space<vmem>>, %arg3: memref<64x64xbf16, #tpu.memory_space<vmem>>, %arg4: memref<1x64xf32, #tpu.memory_space<vmem>>, %arg5: memref<64x128xbf16, #tpu.memory_space<vmem>>, %arg6: memref<1x128xf32, #tpu.memory_space<vmem>>, %arg7: memref<8x128xbf16, #tpu.memory_space<vmem>>) attributes {dimension_semantics = [], scalar_prefetch = 0 : i64, scratch_operands = 0 : i64, tpu.core_type = #tpu.core_type<tc>} {
    %c0 = arith.constant 0 : index
    %c0_0 = arith.constant 0 : index
    %0 = vector.load %arg0[%c0, %c0_0] : memref<8x32xf32, #tpu.memory_space<vmem>>, vector<8x32xf32>
    %c0_1 = arith.constant 0 : index
    %c0_2 = arith.constant 0 : index
    %1 = vector.load %arg1[%c0_1, %c0_2] : memref<32x64xbf16, #tpu.memory_space<vmem>>, vector<32x64xbf16>
    %c0_3 = arith.constant 0 : index
    %c0_4 = arith.constant 0 : index
    %2 = vector.load %arg2[%c0_3, %c0_4] : memref<1x64xf32, #tpu.memory_space<vmem>>, vector<1x64xf32>
    %3 = arith.truncf %0 : vector<8x32xf32> to vector<8x32xbf16>
    %cst = arith.constant dense<0.000000e+00> : vector<8x64xf32>
    %4 = tpu.matmul %3, %1, %cst {dimension_numbers = #tpu.dot_dimension_numbers<[1], [0], [0], [1], [0, 0, 1, 1], [], []>} : vector<8x32xbf16>, vector<32x64xbf16>, vector<8x64xf32> -> vector<8x64xf32>
    %5 = vector.broadcast %2 : vector<1x64xf32> to vector<8x64xf32>
    %6 = arith.addf %4, %5 : vector<8x64xf32>
    %cst_5 = arith.constant 0.000000e+00 : f32
    %7 = vector.broadcast %cst_5 : f32 to vector<8x64xf32>
    %8 = arith.maximumf %6, %7 : vector<8x64xf32>
    %c0_6 = arith.constant 0 : index
    %c0_7 = arith.constant 0 : index
    %9 = vector.load %arg3[%c0_6, %c0_7] : memref<64x64xbf16, #tpu.memory_space<vmem>>, vector<64x64xbf16>
    %c0_8 = arith.constant 0 : index
    %c0_9 = arith.constant 0 : index
    %10 = vector.load %arg4[%c0_8, %c0_9] : memref<1x64xf32, #tpu.memory_space<vmem>>, vector<1x64xf32>
    %11 = arith.truncf %8 : vector<8x64xf32> to vector<8x64xbf16>
    %cst_10 = arith.constant dense<0.000000e+00> : vector<8x64xf32>
    %12 = tpu.matmul %11, %9, %cst_10 {dimension_numbers = #tpu.dot_dimension_numbers<[1], [0], [0], [1], [0, 0, 1, 1], [], []>} : vector<8x64xbf16>, vector<64x64xbf16>, vector<8x64xf32> -> vector<8x64xf32>
    %13 = vector.broadcast %10 : vector<1x64xf32> to vector<8x64xf32>
    %14 = arith.addf %12, %13 : vector<8x64xf32>
    %cst_11 = arith.constant 0.000000e+00 : f32
    %15 = vector.broadcast %cst_11 : f32 to vector<8x64xf32>
    %16 = arith.maximumf %14, %15 : vector<8x64xf32>
    %c0_12 = arith.constant 0 : index
    %c0_13 = arith.constant 0 : index
    %17 = vector.load %arg5[%c0_12, %c0_13] : memref<64x128xbf16, #tpu.memory_space<vmem>>, vector<64x128xbf16>
    %c0_14 = arith.constant 0 : index
    %c0_15 = arith.constant 0 : index
    %18 = vector.load %arg6[%c0_14, %c0_15] : memref<1x128xf32, #tpu.memory_space<vmem>>, vector<1x128xf32>
    %19 = arith.truncf %16 : vector<8x64xf32> to vector<8x64xbf16>
    %cst_16 = arith.constant dense<0.000000e+00> : vector<8x128xf32>
    %20 = tpu.matmul %19, %17, %cst_16 {dimension_numbers = #tpu.dot_dimension_numbers<[1], [0], [0], [1], [0, 0, 1, 1], [], []>} : vector<8x64xbf16>, vector<64x128xbf16>, vector<8x128xf32> -> vector<8x128xf32>
    %21 = vector.broadcast %18 : vector<1x128xf32> to vector<8x128xf32>
    %22 = arith.addf %20, %21 : vector<8x128xf32>
    %cst_17 = arith.constant 0.000000e+00 : f32
    %23 = vector.broadcast %cst_17 : f32 to vector<8x128xf32>
    %24 = arith.maximumf %22, %23 : vector<8x128xf32>
    %25 = arith.truncf %24 : vector<8x128xf32> to vector<8x128xbf16>
    %c0_18 = arith.constant 0 : index
    %c0_19 = arith.constant 0 : index
    %26 = vector.load %arg7[%c0_18, %c0_19] : memref<8x128xbf16, #tpu.memory_space<vmem>>, vector<8x128xbf16>
    tpu.vector_store %arg7[%c0_18, %c0_19], %25 {strides = array<i32>} : memref<8x128xbf16, #tpu.memory_space<vmem>>, vector<8x128xbf16>,
    return
  }
}

</mosaic_0001>

<bundles_post_ra>
// kernel: tpu_custom_call.1
= control target key start
LH: loop header
LB: loop body
LE: loop exit
PB: predicated region body
PF: predicated region fallthrough
CT: control target
= control target key end

     0   :  { %12 = vsyncpa [#allocation3], 0  ;;  %s669_s0 = inlined_call_operand.hbm [shape: f32[8,32], index: 0, kind: input, shape index: {}]   ;;  %s670_s1 = inlined_call_operand.hbm [shape: bf16[32,64], index: 1, kind: input, shape index: {}]   ;;  %s671_s2 = inlined_call_operand.vmem [shape: f32[1,64], index: 2, kind: input, shape index: {}]   ;;  %s672_s3 = inlined_call_operand.hbm [shape: bf16[64,64], index: 3, kind: input, shape index: {}]   ;;  %s673_s4 = inlined_call_operand.vmem [shape: f32[1,64], index: 4, kind: input, shape index: {}]   ;;  %s674_s5 = inlined_call_operand.hbm [shape: bf16[64,128], index: 5, kind: input, shape index: {}]   ;;  %s675_s6 = inlined_call_operand.vmem [shape: f32[1,128], index: 6, kind: input, shape index: {}]   ;;  %s676_s7 = inlined_call_operand.hbm [shape: bf16[8,128], index: 7, kind: output, shape index: {}]  }
   0x1   :  { %13 = vsyncpa [#allocation6], 0 }
   0x2   :  { %14 = vsyncpa [#allocation9], 0 }
   0x3   :  { %15 = vsyncpa [#allocation4], 0  ;;  %s537_s24 = smov [#allocation5]   ;;  %s419_s28 = scalar_lea.hbm %s670_s1, 256 }
   0x4   :  { %s31_s25 = sshll.u32 %s537_s24, 4  ;;  %p420_p0 = scmp.ne.s32.totalorder %s670_s1, %s419_s28  ;;  %s32_s25 = int_to_ptr.vmem [resolvable:$true] %s31_s25 }
   0x5   :  { %p423_p1 = scmp.lt.u32.totalorder %s419_s28, %s670_s1 }
   0x7   :  { %p425_p2 = pnand %p423_p1, %p420_p0 }
   0x9   :  { %428 = shalt.err (!%p425_p2)
}
   0xa   :  { %s429_s10 = scalar_lea.vmem %s32_s25, 256  ;;  %p434_p4 = scmp.lt.s32.totalorder %s32_s25, %s32_s25 }
   0xb   :  { %p430_p3 = scmp.ne.s32.totalorder %s32_s25, %s429_s10  ;;  %p435_p5 = scmp.lt.s32.totalorder %s429_s10, %s429_s10 }
   0xd   :  { %p436_p6 = por %p435_p5, %p434_p4 }
   0xf   :  { %p437_p7 = pnand %p436_p6, %p430_p3 }
  0x11   :  { %440 = shalt.err (!%p437_p7)
}
  0x12   :  { %s538_s11 = smov 64   ;;  %s539_s12 = smov 4  }
  0x13   :  { %37 = dma.hbm_to_vmem [thread:$0]  %s670_s1, 256, %s32_s25, [#allocation6], %s538_s11, %s538_s11, %s539_s12  }
  0x14   :  { %s540_s15 = smov [#allocation2]   ;;  %s541_s17 = smov [#allocation7]  }
  0x15   :  { %s22_s16 = sshll.u32 %s540_s15, 4  ;;  %s45_s18 = sshll.u32 %s541_s17, 4  ;;  %s23_s16 = int_to_ptr.vmem [resolvable:$true] %s22_s16  ;;  %s46_s18 = int_to_ptr.vmem [resolvable:$true] %s45_s18 }
  0x16   :  { %s441_s21 = scalar_lea.hbm %s669_s0, 128 }
  0x17   :  { %p442_p8 = scmp.ne.s32.totalorder %s669_s0, %s441_s21  ;;  %p445_p9 = scmp.lt.u32.totalorder %s441_s21, %s669_s0 }
  0x19   :  { %p447_p10 = pnand %p445_p9, %p442_p8 }
  0x1b   :  { %450 = shalt.err (!%p447_p10)
}
  0x1c   :  { %s451_s1 = scalar_lea.vmem %s23_s16, 128  ;;  %p456_p12 = scmp.lt.s32.totalorder %s23_s16, %s23_s16 }
  0x1d   :  { %p452_p11 = scmp.ne.s32.totalorder %s23_s16, %s451_s1  ;;  %p457_p13 = scmp.lt.s32.totalorder %s451_s1, %s451_s1 }
  0x1f   :  { %p458_p0 = por %p457_p13, %p456_p12 }
  0x21   :  { %p459_p1 = pnand %p458_p0, %p452_p11 }
  0x23   :  { %462 = shalt.err (!%p459_p1)
}
  0x24   :  { %25 = dma.hbm_to_vmem [thread:$0]  %s669_s0, 128, %s23_s16, [#allocation3]  }
  0x25   :  { %s463_s30 = scalar_lea.hbm %s672_s3, 512 }
  0x26   :  { %p464_p2 = scmp.ne.s32.totalorder %s672_s3, %s463_s30  ;;  %p467_p3 = scmp.lt.u32.totalorder %s463_s30, %s672_s3 }
  0x28   :  { %p469_p4 = pnand %p467_p3, %p464_p2 }
  0x2a   :  { %472 = shalt.err (!%p469_p4)
}
  0x2b   :  { %s473_s14 = scalar_lea.vmem %s46_s18, 512  ;;  %p478_p6 = scmp.lt.s32.totalorder %s46_s18, %s46_s18 }
  0x2c   :  { %p474_p5 = scmp.ne.s32.totalorder %s46_s18, %s473_s14  ;;  %p479_p7 = scmp.lt.s32.totalorder %s473_s14, %s473_s14 }
  0x2e   :  { %p480_p8 = por %p479_p7, %p478_p6 }
  0x30   :  { %p481_p9 = pnand %p480_p8, %p474_p5 }
  0x32   :  { %484 = shalt.err (!%p481_p9)
}
  0x33   :  { %51 = dma.hbm_to_vmem [thread:$0]  %s672_s3, 512, %s46_s18, [#allocation6], %s538_s11, %s538_s11, %s539_s12  }
  0x34   :  { %s542_s16 = smov [#allocation8]   ;;  %s485_s21 = scalar_lea.hbm %s674_s5, 512 }
  0x35   :  { %s59_s17 = sshll.u32 %s542_s16, 4  ;;  %p486_p10 = scmp.ne.s32.totalorder %s674_s5, %s485_s21  ;;  %s60_s17 = int_to_ptr.vmem [resolvable:$true] %s59_s17 }
  0x36   :  { %p489_p11 = scmp.lt.u32.totalorder %s485_s21, %s674_s5 }
  0x38   :  { %p491_p12 = pnand %p489_p11, %p486_p10 }
  0x3a   :  { %494 = shalt.err (!%p491_p12)
}
  0x3b   :  { %s495_s1 = scalar_lea.vmem %s60_s17, 512  ;;  %p500_p0 = scmp.lt.s32.totalorder %s60_s17, %s60_s17 }
  0x3c   :  { %p496_p13 = scmp.ne.s32.totalorder %s60_s17, %s495_s1  ;;  %p501_p1 = scmp.lt.s32.totalorder %s495_s1, %s495_s1 }
  0x3e   :  { %p502_p2 = por %p501_p1, %p500_p0 }
  0x40   :  { %p503_p3 = pnand %p502_p2, %p496_p13 }
  0x42   :  { %506 = shalt.err (!%p503_p3)
}
  0x43   :  { %65 = dma.hbm_to_vmem [thread:$0]  %s674_s5, 512, %s60_s17, [#allocation9], %s538_s11, %s538_s11, %s539_s12  }
  0x44   :  { %529 = dma.done.wait [#allocation3], 128  }
  0x45   :  { %530 = vsyncadd [#allocation3], 4294967168 }
  0x46   :  { %531 = dma.done.wait [#allocation6], 768  }
  0x47   :  { %532 = vsyncadd [#allocation6], 4294966528 }
  0x48   :  { %533 = dma.done.wait [#allocation9], 512  }
  0x49   :  { %534 = vsyncadd [#allocation9], 4294966784  ;;  %v543_v0 = vmov 0.0   ;;  %vm544_vm0 = vmmov 0   ;;  %v409_v1 = vld [vmem:[#allocation5] sm:$0xff]   ;;  %v410_v2 = vld [vmem:[#allocation5 + $0x8] sm:$0xff]  }
  0x4a   :  { %368 = vmatprep.subr.bf16.mxu0 %v543_v0  ;;  %372 = vmatprep.mubr.msk.bf16.mxu0 %vm544_vm0, %v543_v0  ;;  %v81_v3 = vld [vmem:[#allocation2] sm:$0xff]  ;;  %v411_v4 = vld [vmem:[#allocation7] sm:$0xff]   ;;  %vm106_vm1 = vcmask 261120   ;;  %v413_v7 = vld [vmem:[#allocation7 + $0x10] sm:$0xff]   ;;  %vm191_vm2 = vcmask 523264   ;;  %s545_s28 = smov [#allocation10]  }
  0x4b   :  { %376 = vmatprep.subr.bf16.mxu1 %v543_v0  ;;  %384 = vmatprep.mubr.msk.bf16.mxu1 %vm544_vm0, %v543_v0  ;;  %v412_v5 = vld [vmem:[#allocation7 + $0x8] sm:$0xff]   ;;  %v87_v6 = vpack.c.bf16 %v81_v3, %v81_v3  ;;  %v414_v8 = vld [vmem:[#allocation7 + $0x18] sm:$0xff]   ;;  %v415_v9 = vld [vmem:[#allocation8] sm:$0xff]   ;;  %s328_s29 = sshll.u32 %s545_s28, 4  ;;  %s329_s29 = int_to_ptr.vmem [resolvable:$true] %s328_s29 }
  0x4c   :  { %369 = vmatpush3.bf16.msra.mxu0 %v409_v1  ;;  %377 = vmatpush3.bf16.msra.mxu1 %v411_v4  ;;  %v416_v10 = vld [vmem:[#allocation8 + $0x8] sm:$0xff]   ;;  %v417_v19 = vld [vmem:[#allocation8 + $0x10] sm:$0xff]   ;;  %v418_v20 = vld [vmem:[#allocation8 + $0x18] sm:$0xff]   ;;  %p512_p5 = scmp.lt.s32.totalorder %s329_s29, %s329_s29 }
  0x4d   :  { %370 = vmatprep.subr.bf16.mxu0 %v543_v0  ;;  %378 = vmatprep.subr.bf16.mxu1 %v543_v0  ;;  %v339_v11 = vld [vmem:[%s671_s2] ss:$0 sm:$0xff] }
  0x4e   :  { %v343_v21 = vld [vmem:[%s673_s4] ss:$0 sm:$0xff]  ;;  %s507_s4 = scalar_lea.vmem %s329_s29, 64 }
  0x4f   :  { %v349_v29 = vld [vmem:[%s675_s6] ss:$0 sm:$0xff]  ;;  %p508_p4 = scmp.ne.s32.totalorder %s329_s29, %s507_s4  ;;  %p513_p6 = scmp.lt.s32.totalorder %s507_s4, %s507_s4 }
  0x50   :  { %371 = vmatpush3.bf16.msra.mxu0 %v410_v2  ;;  %379 = vmatpush3.bf16.msra.mxu1 %v412_v5 }
  0x51   :  { %388 = vmatprep.subr.bf16.mxu0 %v543_v0  ;;  %380 = vmatprep.subr.bf16.mxu1 %v543_v0  ;;  %p514_p7 = por %p513_p6, %p512_p5 }
  0x53   :  { %373 = vmatmul.mubr.msk.bf16.vlgmr.msra.gmra.mrb[0].mxu0 %vm106_vm1, %v87_v6  ;;  %p515_p8 = pnand %p514_p7, %p508_p4 }
  0x54   :  { %396 = vmatprep.mubr.msk.bf16.mxu0 %vm544_vm0, %v543_v0  ;;  %381 = vmatpush3.bf16.msra.mxu1 %v413_v7 }
  0x55   :  { %382 = vmatprep.subr.bf16.mxu1 %v543_v0  ;;  %389 = vmatpush3.bf16.msra.mxu0 %v415_v9 }
  0x56   :  { %390 = vmatprep.subr.bf16.mxu0 %v543_v0 }
  0x58   :  { %383 = vmatpush3.bf16.msra.mxu1 %v414_v8 }
  0x59   :  { %391 = vmatpush3.bf16.msra.mxu0 %v416_v10 }
  0x5a   :  { %392 = vmatprep.subr.bf16.mxu0 %v543_v0 }
  0x5d   :  { %393 = vmatpush3.bf16.msra.mxu0 %v417_v19 }
  0x5e   :  { %394 = vmatprep.subr.bf16.mxu0 %v543_v0 }
  0x61   :  { %395 = vmatpush3.bf16.msra.mxu0 %v418_v20 }
 0x126   :  { %v144_v12 = vpop.f32.mrb[0].mxu0 }
 0x127   :  { %v145_v13 = vadd.f32 %v339_v11, %v144_v12  ;;  %v374_v14 = vpop.f32.mrb[1].mxu0 }
 0x128   :  { %v147_v15 = vpop.f32.mrb[2].mxu0 }
 0x129   :  { %v150_v16 = vmax.f32 %v145_v13, 0.0  ;;  %v375_v17 = vpop.f32.mrb[3].mxu0 }
 0x12b   :  { %v160_v18 = vpack.c.bf16 %v150_v16, %v150_v16 }
 0x12d   :  { %385 = vmatmul.mubr.msk.bf16.vlgmr.msra.gmra.mrb[0].mxu1 %vm191_vm2, %v160_v18 }
 0x200   :  { %v229_v22 = vpop.f32.mrb[0].mxu1 }
 0x201   :  { %v230_v23 = vadd.f32 %v343_v21, %v229_v22  ;;  %v386_v24 = vpop.f32.mrb[1].mxu1 }
 0x202   :  { %v232_v25 = vpop.f32.mrb[2].mxu1 }
 0x203   :  { %v235_v26 = vmax.f32 %v230_v23, 0.0  ;;  %v387_v27 = vpop.f32.mrb[3].mxu1 }
 0x205   :  { %v245_v28 = vpack.c.bf16 %v235_v26, %v235_v26 }
 0x207   :  { %397 = vmatmul.mubr.msk.bf16.vlgmr.msra.gmra.mrb[4].mxu0 %vm191_vm2, %v245_v28 }
 0x2da   :  { %v313_v30 = vpop.f32.mrb[4].mxu0 }
 0x2db   :  { %v314_v31 = vadd.f32 %v349_v29, %v313_v30  ;;  %v398_v32 = vpop.f32.mrb[5].mxu0 }
 0x2dc   :  { %v316_v33 = vpop.f32.mrb[6].mxu0 }
 0x2dd   :  { %v319_v34 = vmax.f32 %v314_v31, 0.0  ;;  %v399_v35 = vpop.f32.mrb[7].mxu0 }
 0x2df   :  { %v320_v36 = vpack.c.bf16 %v319_v34, %v319_v34 }
 0x2e1   :  { %321 = vst [vmem:[#allocation10] sm:$0xf] %v320_v36 }
 0x2e2   :  { %518 = shalt.err (!%p515_p8)
}
 0x2e3   :  { %s519_s8 = scalar_lea.hbm %s676_s7, 64 }
 0x2e4   :  { %p520_p9 = scmp.ne.s32.totalorder %s676_s7, %s519_s8  ;;  %p523_p10 = scmp.lt.u32.totalorder %s519_s8, %s676_s7 }
 0x2e6   :  { %p525_p11 = pnand %p523_p10, %p520_p9 }
 0x2e8   :  { %528 = shalt.err (!%p525_p11)
}
 0x2e9   :  { %331 = dma.vmem_to_hbm [thread:$0]  %s329_s29, 64, %s676_s7, [#allocation4]  }
 0x2ea   :  { %535 = dma.done.wait [#allocation4], 64  }
 0x2eb   :  { %536 = vsyncadd [#allocation4], 4294967232 }
 0x2ec   :  { %335 = vsyncpa [#allocation3], 1 }
 0x2ed   :  { %336 = vsyncpa [#allocation6], 1 }
 0x2ee   :  { %337 = vsyncpa [#allocation9], 1 }
 0x2ef   :  { %338 = vsyncpa [#allocation4], 1 }

</bundles_post_ra>
